<compile_context>
chip_gen: v5e
topology: v5e:2x2
jax: 0.10.0
libtpu: 0.0.40
codegen_flags: <defaults>
</compile_context>

<pallas_src>
import jax
import jax.numpy as jnp
import numpy as np
from jax.experimental import pallas as pl
from jax.experimental.pallas import tpu as pltpu

LANE = 128           # lane width / padded hidden dim
ONE_LANE = LANE - 1  # spare lane carrying a constant 1.0 (folds biases into matmuls)
TM_CAP = 1024        # max batch-tile rows


def _round_up(n, m):
    return ((n + m - 1) // m) * m


def _cdiv(a, b):
    return (a + b - 1) // b


def _choose_tiling(batch):
    """Pick (TM, B_pad, n_tiles).

    Large tiles (<= TM_CAP) amortize the ~0.35us grid-step overhead; >=2 steps
    once tiles of >=128 real rows are possible (v7x two-TensorCore sharding);
    TM = ceil(B / n_tiles) rounded to the 128-lane packing granularity keeps
    batch-pad waste small (no near-empty dead tiles)."""
    if batch < 2 * LANE:
        tm = _round_up(max(batch, 1), 8)
        return tm, tm, 1
    n_tiles = max(_cdiv(batch, TM_CAP), 2)
    tm = _round_up(_cdiv(batch, n_tiles), LANE)
    return tm, tm * n_tiles, n_tiles


def _make_mlp_kernel(n_mid):
    """Fused MLP forward on one (TM, F) batch tile.

    refs = (x, w1, b1, w_mid_0..w_mid_{n_mid-1}, w_last, out)
      x      : (TM, F)            f32   (cast to bf16 in-kernel)
      w1     : (F, 128)           bf16
      b1     : (1, 128)           f32   (lane ONE_LANE holds 1.0)
      w_mid_k: (128, 128)         bf16  (row ONE_LANE holds the bias; [ONE,ONE]=1)
      w_last : (num_outputs, 128) f32   (column ONE_LANE holds the bias), transposed
      out    : (num_outputs, TM)  f32   lane-dense packed output
    """

    def kernel(*refs):
        x_ref, w1_ref, b1_ref = refs[0], refs[1], refs[2]
        mid_refs = refs[3:3 + n_mid]
        wlast_ref = refs[3 + n_mid]
        o_ref = refs[4 + n_mid]

        # Layer 1: bf16 cast happens in-kernel; bias added in the f32 accumulator.
        x = x_ref[...].astype(jnp.bfloat16)                            # (TM, F)
        h = jnp.dot(x, w1_ref[...],
                    preferred_element_type=jnp.float32) + b1_ref[...]  # (TM, 128) f32
        # b1 plants 1.0 in lane ONE_LANE -> h[:, ONE_LANE] == 1, which the padded
        # mid/last weights use to fold their bias adds into the matmuls.

        # Hidden layers: ReLU fused with the bf16 down-cast (ReLU commutes with cast).
        for w_ref in mid_refs:
            h = jnp.maximum(h.astype(jnp.bfloat16), 0)                 # bf16 ReLU
            h = jnp.dot(h, w_ref[...],
                        preferred_element_type=jnp.float32)            # (TM, 128) f32

        h = jnp.maximum(h, 0.0)                                        # last ReLU, f32

        # Final layer, transposed: (num_outputs,128) @ (128,TM) -> (num_outputs,TM).
        # Lane-dense along the batch dim -> writeback is num_outputs*4 B per row
        # instead of a 512 B padded slab.  f32 (tiny; XLU/MXU have plenty of slack).
        o_ref[...] = jnp.dot(wlast_ref[...], h.T,
                             preferred_element_type=jnp.float32)

    return kernel


def dnn_forward(x, params):
    """x: (B, in_features) float32.
    params: list of (W_t, b) with W_t shaped (in, out) [pre-transposed vs. torch
    nn.Linear] and b shaped (1, out), all float32.
    Returns (B, num_outputs) float32."""
    assert len(params) >= 2, "need at least one hidden layer + output layer"
    B, in_features = x.shape
    hidden = params[0][0].shape[1]
    num_outputs = params[-1][0].shape[1]
    assert hidden <= ONE_LANE, "hidden_size must leave a spare lane for the bias fold"
    for w, _ in params[1:-1]:
        assert w.shape == (hidden, hidden)

    TM, B_pad, n_tiles = _choose_tiling(B)
    F_pad = _round_up(in_features, 8)   # MXU-friendly K; no-op for aligned widths

    # --- input: unpadded feature width, f32; only pad if shapes require it ---
    x = x.astype(jnp.float32)
    if (B_pad, F_pad) == x.shape:
        x_p = x
    else:
        x_p = jnp.zeros((B_pad, F_pad), jnp.float32).at[:B, :in_features].set(x)

    # --- layer 1: weight bf16 (F_pad, 128); bias f32 with the 1.0 marker lane ---
    w1, b1 = params[0]
    w1_p = jnp.zeros((F_pad, LANE), jnp.bfloat16)
    w1_p = w1_p.at[:in_features, :hidden].set(w1.astype(jnp.bfloat16))
    b1_p = jnp.zeros((1, LANE), jnp.float32).at[:, :hidden].set(b1.astype(jnp.float32))
    b1_p = b1_p.at[0, ONE_LANE].set(1.0)

    # --- hidden layers: bias folded into row ONE_LANE, ones-lane propagated ---
    mid_ws = []
    for w, b in params[1:-1]:
        w_p = jnp.zeros((LANE, LANE), jnp.bfloat16)
        w_p = w_p.at[:hidden, :hidden].set(w.astype(jnp.bfloat16))
        w_p = w_p.at[ONE_LANE, :hidden].set(b[0].astype(jnp.bfloat16))
        w_p = w_p.at[ONE_LANE, ONE_LANE].set(1.0)
        mid_ws.append(w_p)

    # --- last layer: f32, stored transposed (num_outputs, 128), bias in col ONE ---
    w_last, b_last = params[-1]
    wl_p = jnp.zeros((num_outputs, LANE), jnp.float32)
    wl_p = wl_p.at[:, :hidden].set(w_last.astype(jnp.float32).T)
    wl_p = wl_p.at[:, ONE_LANE].set(b_last[0].astype(jnp.float32))

    flat = [w1_p, b1_p] + mid_ws + [wl_p]
    n_mid = len(mid_ws)

    # --- BlockSpecs: x / out tiled over batch; params resident (constant index) ---
    x_spec = pl.BlockSpec((TM, F_pad), lambda i: (i, 0))
    param_specs = [pl.BlockSpec(a.shape, lambda i: (0, 0)) for a in flat]
    out_spec = pl.BlockSpec((num_outputs, TM), lambda i: (0, i))

    flops = 2 * B_pad * (F_pad * LANE + n_mid * LANE * LANE + LANE * num_outputs)
    bytes_accessed = (x_p.size * x_p.dtype.itemsize
                      + sum(a.size * a.dtype.itemsize for a in flat)
                      + num_outputs * B_pad * 4)
    cost = pl.CostEstimate(flops=int(flops), transcendentals=0,
                           bytes_accessed=int(bytes_accessed))

    out_packed = pl.pallas_call(
        _make_mlp_kernel(n_mid),
        out_shape=jax.ShapeDtypeStruct((num_outputs, B_pad), jnp.float32),
        grid=(n_tiles,),
        in_specs=[x_spec] + param_specs,
        out_specs=out_spec,
        compiler_params=pltpu.CompilerParams(
            dimension_semantics=("parallel",)),
        cost_estimate=cost,
    )(x_p, *flat)

    # (num_outputs, B_pad) -> (B, num_outputs)
    return out_packed[:, :B].T


def init_params(key, in_features, num_layers=3, hidden_size=50, num_outputs=1):
    """Deterministic init mimicking PyTorch nn.Linear default
    (U(-1/sqrt(fan_in), 1/sqrt(fan_in))). Weights stored transposed (in, out)."""
    sizes = [in_features] + [hidden_size] * num_layers + [num_outputs]
    params = []
    for in_size, out_size in zip(sizes[:-1], sizes[1:]):
        key, kw, kb = jax.random.split(key, 3)
        bound = 1.0 / np.sqrt(in_size)
        w_t = jax.random.uniform(kw, (in_size, out_size), jnp.float32,
                                 minval=-bound, maxval=bound)
        b = jax.random.uniform(kb, (1, out_size), jnp.float32,
                               minval=-bound, maxval=bound)
        params.append((w_t, b))
    return params


def reference_forward_f32(x, params):
    """Plain-JAX f32 reference matching the PyTorch forward exactly."""
    out = x
    n = len(params)
    for i, (w, b) in enumerate(params):
        out = out @ w + b
        if i < n - 1:
            out = jnp.maximum(out, 0.0)
    return out


def reference_forward_kernel_numerics(x, params):
    """Mirror the kernel's numerics: bf16 matmul operands / f32 accumulation for
    all but the last layer; layer-1 bias f32; hidden-layer biases rounded to bf16
    (they ride inside the bf16 weight matrix); last layer fully f32."""
    w1, b1 = params[0]
    h = jnp.dot(x.astype(jnp.bfloat16), w1.astype(jnp.bfloat16),
                preferred_element_type=jnp.float32) + b1
    for w, b in params[1:-1]:
        h = jnp.maximum(h.astype(jnp.bfloat16), 0)
        h = jnp.dot(h, w.astype(jnp.bfloat16),
                    preferred_element_type=jnp.float32)
        h = h + b.astype(jnp.bfloat16).astype(jnp.float32)
    h = jnp.maximum(h, 0.0)
    w_last, b_last = params[-1]
    return jnp.dot(h, w_last, preferred_element_type=jnp.float32) + b_last


if __name__ == "__main__":
    key = jax.random.PRNGKey(0)
    key, kx = jax.random.split(key)

    # Small shapes consistent with the module defaults.
    batch, in_features = 8, 32
    x = jax.random.normal(kx, (batch, in_features), jnp.float32)
    params = init_params(key, in_features, num_layers=3,
                         hidden_size=50, num_outputs=1)

    y = jax.block_until_ready(dnn_forward(x, params))
    assert y.shape == (batch, 1)

    # Exact-semantics check (bf16 matmuls, folded biases) and f32 fidelity check.
    np.testing.assert_allclose(
        np.asarray(y), np.asarray(reference_forward_kernel_numerics(x, params)),
        rtol=1e-3, atol=1e-3)
    np.testing.assert_allclose(
        np.asarray(y), np.asarray(reference_forward_f32(x, params)),
        rtol=5e-2, atol=5e-2)

    # Second config: exercises the multi-tile grid (v7x two-core path),
    # batch-row padding and a non-power-of-two feature width.
    key, kx2, kp2 = jax.random.split(key, 3)
    batch2, in_features2 = 300, 50
    x2 = jax.random.normal(kx2, (batch2, in_features2), jnp.float32)
    params2 = init_params(kp2, in_features2, num_layers=3,
                          hidden_size=50, num_outputs=1)
    y2 = jax.block_until_ready(dnn_forward(x2, params2))
    assert y2.shape == (batch2, 1)
    np.testing.assert_allclose(
        np.asarray(y2), np.asarray(reference_forward_kernel_numerics(x2, params2)),
        rtol=1e-3, atol=1e-3)

    # TODO(synk): norm_penalty() is a training-time weight-norm regularizer, not
    # part of the forward pass; not implemented as a kernel.
    print("KERNEL_OK")
</pallas_src>

<mosaic_0001>
module attributes {stable_mosaic.version = 11 : i64} {
  func.func @kernel(%arg0: i32, %arg1: memref<8x32xf32, #tpu.memory_space<vmem>>, %arg2: memref<32x128xbf16, #tpu.memory_space<vmem>>, %arg3: memref<1x128xf32, #tpu.memory_space<vmem>>, %arg4: memref<128x128xbf16, #tpu.memory_space<vmem>>, %arg5: memref<128x128xbf16, #tpu.memory_space<vmem>>, %arg6: memref<1x128xf32, #tpu.memory_space<vmem>>, %arg7: memref<1x8xf32, #tpu.memory_space<vmem>>) attributes {dimension_semantics = [#tpu.dimension_semantics<parallel>], iteration_bounds = array<i64: 1>, scalar_prefetch = 0 : i64, scratch_operands = 0 : i64, tpu.core_type = #tpu.core_type<tc>, window_params = [{transform_indices = @transform_0, window_bounds = array<i64: 8, 32>}, {pipeline_mode = #tpu.pipeline_mode<synchronous>, transform_indices = @transform_1, window_bounds = array<i64: 32, 128>}, {pipeline_mode = #tpu.pipeline_mode<synchronous>, transform_indices = @transform_2, window_bounds = array<i64: 1, 128>}, {pipeline_mode = #tpu.pipeline_mode<synchronous>, transform_indices = @transform_3, window_bounds = array<i64: 128, 128>}, {pipeline_mode = #tpu.pipeline_mode<synchronous>, transform_indices = @transform_4, window_bounds = array<i64: 128, 128>}, {pipeline_mode = #tpu.pipeline_mode<synchronous>, transform_indices = @transform_5, window_bounds = array<i64: 1, 128>}, {transform_indices = @transform_6, window_bounds = array<i64: 1, 8>}]} {
    %c0 = arith.constant 0 : index
    %c0_0 = arith.constant 0 : index
    %0 = vector.load %arg1[%c0, %c0_0] : memref<8x32xf32, #tpu.memory_space<vmem>>, vector<8x32xf32>
    %1 = arith.truncf %0 : vector<8x32xf32> to vector<8x32xbf16>
    %c0_1 = arith.constant 0 : index
    %c0_2 = arith.constant 0 : index
    %2 = vector.load %arg2[%c0_1, %c0_2] : memref<32x128xbf16, #tpu.memory_space<vmem>>, vector<32x128xbf16>
    %cst = arith.constant dense<0.000000e+00> : vector<8x128xf32>
    %3 = tpu.matmul %1, %2, %cst {dimension_numbers = #tpu.dot_dimension_numbers<[1], [0], [0], [1], [0, 0, 1, 1], [], []>} : vector<8x32xbf16>, vector<32x128xbf16>, vector<8x128xf32> -> vector<8x128xf32>
    %c0_3 = arith.constant 0 : index
    %c0_4 = arith.constant 0 : index
    %4 = vector.load %arg3[%c0_3, %c0_4] : memref<1x128xf32, #tpu.memory_space<vmem>>, vector<1x128xf32>
    %5 = vector.broadcast %4 : vector<1x128xf32> to vector<8x128xf32>
    %6 = arith.addf %3, %5 : vector<8x128xf32>
    %7 = arith.truncf %6 : vector<8x128xf32> to vector<8x128xbf16>
    %cst_5 = arith.constant 0.000000e+00 : bf16
    %8 = vector.broadcast %cst_5 : bf16 to vector<8x128xbf16>
    %9 = arith.maximumf %7, %8 : vector<8x128xbf16>
    %c0_6 = arith.constant 0 : index
    %c0_7 = arith.constant 0 : index
    %10 = vector.load %arg4[%c0_6, %c0_7] : memref<128x128xbf16, #tpu.memory_space<vmem>>, vector<128x128xbf16>
    %cst_8 = arith.constant dense<0.000000e+00> : vector<8x128xf32>
    %11 = tpu.matmul %9, %10, %cst_8 {dimension_numbers = #tpu.dot_dimension_numbers<[1], [0], [0], [1], [0, 0, 1, 1], [], []>} : vector<8x128xbf16>, vector<128x128xbf16>, vector<8x128xf32> -> vector<8x128xf32>
    %12 = arith.truncf %11 : vector<8x128xf32> to vector<8x128xbf16>
    %cst_9 = arith.constant 0.000000e+00 : bf16
    %13 = vector.broadcast %cst_9 : bf16 to vector<8x128xbf16>
    %14 = arith.maximumf %12, %13 : vector<8x128xbf16>
    %c0_10 = arith.constant 0 : index
    %c0_11 = arith.constant 0 : index
    %15 = vector.load %arg5[%c0_10, %c0_11] : memref<128x128xbf16, #tpu.memory_space<vmem>>, vector<128x128xbf16>
    %cst_12 = arith.constant dense<0.000000e+00> : vector<8x128xf32>
    %16 = tpu.matmul %14, %15, %cst_12 {dimension_numbers = #tpu.dot_dimension_numbers<[1], [0], [0], [1], [0, 0, 1, 1], [], []>} : vector<8x128xbf16>, vector<128x128xbf16>, vector<8x128xf32> -> vector<8x128xf32>
    %cst_13 = arith.constant 0.000000e+00 : f32
    %17 = vector.broadcast %cst_13 : f32 to vector<8x128xf32>
    %18 = arith.maximumf %16, %17 : vector<8x128xf32>
    %c0_14 = arith.constant 0 : index
    %c0_15 = arith.constant 0 : index
    %19 = vector.load %arg6[%c0_14, %c0_15] : memref<1x128xf32, #tpu.memory_space<vmem>>, vector<1x128xf32>
    %20 = tpu.transpose %18, [1, 0] : vector<8x128xf32> -> vector<128x8xf32>
    %cst_16 = arith.constant dense<0.000000e+00> : vector<1x8xf32>
    %21 = tpu.matmul %19, %20, %cst_16 {dimension_numbers = #tpu.dot_dimension_numbers<[1], [0], [0], [1], [0, 0, 1, 1], [], []>} : vector<1x128xf32>, vector<128x8xf32>, vector<1x8xf32> -> vector<1x8xf32>
    %c0_17 = arith.constant 0 : index
    %c0_18 = arith.constant 0 : index
    %22 = vector.load %arg7[%c0_17, %c0_18] : memref<1x8xf32, #tpu.memory_space<vmem>>, vector<1x8xf32>
    tpu.vector_store %arg7[%c0_17, %c0_18], %21 {strides = array<i32>} : memref<1x8xf32, #tpu.memory_space<vmem>>, vector<1x8xf32>,
    return
  }
  func.func @transform_0(%arg0: i32) -> (i32, i32) {
    %c0_i32 = arith.constant 0 : i32
    %c0_i32_0 = arith.constant 0 : i32
    return %arg0, %c0_i32 : i32, i32
  }
  func.func @transform_1(%arg0: i32) -> (i32, i32) {
    %c0_i32 = arith.constant 0 : i32
    %c0_i32_0 = arith.constant 0 : i32
    %c0_i32_1 = arith.constant 0 : i32
    return %c0_i32, %c0_i32_0 : i32, i32
  }
  func.func @transform_2(%arg0: i32) -> (i32, i32) {
    %c0_i32 = arith.constant 0 : i32
    %c0_i32_0 = arith.constant 0 : i32
    %c0_i32_1 = arith.constant 0 : i32
    return %c0_i32, %c0_i32_0 : i32, i32
  }
  func.func @transform_3(%arg0: i32) -> (i32, i32) {
    %c0_i32 = arith.constant 0 : i32
    %c0_i32_0 = arith.constant 0 : i32
    %c0_i32_1 = arith.constant 0 : i32
    return %c0_i32, %c0_i32_0 : i32, i32
  }
  func.func @transform_4(%arg0: i32) -> (i32, i32) {
    %c0_i32 = arith.constant 0 : i32
    %c0_i32_0 = arith.constant 0 : i32
    %c0_i32_1 = arith.constant 0 : i32
    return %c0_i32, %c0_i32_0 : i32, i32
  }
  func.func @transform_5(%arg0: i32) -> (i32, i32) {
    %c0_i32 = arith.constant 0 : i32
    %c0_i32_0 = arith.constant 0 : i32
    %c0_i32_1 = arith.constant 0 : i32
    return %c0_i32, %c0_i32_0 : i32, i32
  }
  func.func @transform_6(%arg0: i32) -> (i32, i32) {
    %c0_i32 = arith.constant 0 : i32
    %c0_i32_0 = arith.constant 0 : i32
    return %c0_i32, %arg0 : i32, i32
  }
}

</mosaic_0001>

<bundles_post_ra>
// kernel: tpu_custom_call.1
= control target key start
LH: loop header
LB: loop body
LE: loop exit
PB: predicated region body
PF: predicated region fallthrough
CT: control target
= control target key end

     0   :  { %11 = vsyncpa [#allocation3], 0  ;;  %s620_s0 = inlined_call_operand.hbm [shape: f32[8,32], index: 0, kind: input, shape index: {}]   ;;  %s621_s1 = inlined_call_operand.hbm [shape: bf16[32,128], index: 1, kind: input, shape index: {}]   ;;  %s622_s2 = inlined_call_operand.vmem [shape: f32[1,128], index: 2, kind: input, shape index: {}]   ;;  %s623_s3 = inlined_call_operand.hbm [shape: bf16[128,128], index: 3, kind: input, shape index: {}]   ;;  %s624_s4 = inlined_call_operand.hbm [shape: bf16[128,128], index: 4, kind: input, shape index: {}]   ;;  %s625_s5 = inlined_call_operand.vmem [shape: f32[1,128], index: 5, kind: input, shape index: {}]   ;;  %s626_s6 = inlined_call_operand.hbm [shape: f32[1,8], index: 6, kind: output, shape index: {}]  }
   0x1   :  { %12 = vsyncpa [#allocation6], 0 }
   0x2   :  { %13 = vsyncpa [#allocation9], 0  ;;  %s30_s23 = sshll.u32 %s621_s1, 4  ;;  %s31_s23 = int_to_ptr.hbm [resolvable:$true] %s30_s23 }
   0x3   :  { %14 = vsyncpa [#allocation4], 0  ;;  %s557_s24 = smov [#allocation5]   ;;  %s20_s28 = sshll.u32 %s620_s0, 4  ;;  %s21_s28 = int_to_ptr.hbm [resolvable:$true] %s20_s28 }
   0x4   :  { %s32_s25 = sshll.u32 %s557_s24, 4  ;;  %s558_s29 = smov 64   ;;  %s33_s25 = int_to_ptr.vmem [resolvable:$true] %s32_s25 }
   0x5   :  { %s559_s30 = smov 4   ;;  %s560_s7 = smov [#allocation2]  }
   0x6   :  { %38 = dma.hbm_to_vmem [thread:$0]  %s31_s23, 256, %s33_s25, [#allocation6], %s558_s29, %s558_s29, %s559_s30  }
   0x7   :  { %s22_s8 = sshll.u32 %s560_s7, 4  ;;  %s45_s11 = sshll.u32 %s623_s3, 4  ;;  %s23_s8 = int_to_ptr.vmem [resolvable:$true] %s22_s8  ;;  %s46_s11 = int_to_ptr.hbm [resolvable:$true] %s45_s11 }
   0x8   :  { %25 = dma.hbm_to_vmem [thread:$0]  %s21_s28, 128, %s23_s8, [#allocation3]  }
   0x9   :  { %s58_s13 = sshll.u32 %s624_s4, 4  ;;  %s561_s14 = smov [#allocation7]   ;;  %s59_s13 = int_to_ptr.hbm [resolvable:$true] %s58_s13 }
   0xa   :  { %s47_s15 = sshll.u32 %s561_s14, 4  ;;  %s562_s0 = smov [#allocation8]   ;;  %s48_s15 = int_to_ptr.vmem [resolvable:$true] %s47_s15 }
   0xb   :  { %53 = dma.hbm_to_vmem [thread:$0]  %s46_s11, 1024, %s48_s15, [#allocation6], %s558_s29, %s558_s29, %s559_s30  }
   0xc   :  { %s60_s16 = sshll.u32 %s562_s0, 4  ;;  %s61_s16 = int_to_ptr.vmem [resolvable:$true] %s60_s16 }
   0xd   :  { %66 = dma.hbm_to_vmem [thread:$0]  %s59_s13, 1024, %s61_s16, [#allocation9], %s558_s29, %s558_s29, %s559_s30  }
   0xe   :  { %549 = dma.done.wait [#allocation3], 128  }
   0xf   :  { %550 = vsyncadd [#allocation3], 4294967168 }
  0x10   :  { %551 = dma.done.wait [#allocation6], 1280  }
  0x11   :  { %552 = vsyncadd [#allocation6], 4294966016 }
  0x12   :  { %553 = dma.done.wait [#allocation9], 1024  }
  0x13   :  { %554 = vsyncadd [#allocation9], 4294966272  ;;  %v404_v0 = vld [vmem:[#allocation5 + $0x8] sm:$0xff]  ;;  %v403_v2 = vld [vmem:[#allocation5] sm:$0xff]  ;;  %vm108_vm0 = vcmask 261120   ;;  %s563_s18 = smov [#allocation10]  }
  0x14   :  { %v412_v1 = vld [vmem:[#allocation7 + $0x38] sm:$0xff]  ;;  %118 = vmatpush.bf16.msra.mxu0 %v404_v0  ;;  %v86_v3 = vld [vmem:[#allocation2] sm:$0xff]  ;;  %v411_v4 = vld [vmem:[#allocation7 + $0x30] sm:$0xff]  ;;  %s316_s19 = sshll.u32 %s563_s18, 4  ;;  %s318_s22 = sshll.u32 %s626_s6, 4  ;;  %vm309_vm1 = vcmask 57344   ;;  %s317_s19 = int_to_ptr.vmem [resolvable:$true] %s316_s19  ;;  %s319_s22 = int_to_ptr.hbm [resolvable:$true] %s318_s22 }
  0x15   :  { %193 = vmatpush.bf16.msra.mxu1 %v412_v1  ;;  %v87_v5 = vpack.c.bf16 %v86_v3, %v86_v3  ;;  %v410_v6 = vld [vmem:[#allocation7 + $0x28] sm:$0xff]  ;;  %v409_v7 = vld [vmem:[#allocation7 + $0x20] sm:$0xff]  ;;  %v408_v8 = vld [vmem:[#allocation7 + $0x18] sm:$0xff] }
  0x16   :  { %v407_v9 = vld [vmem:[#allocation7 + $0x10] sm:$0xff]  ;;  %v406_v10 = vld [vmem:[#allocation7 + $0x8] sm:$0xff]  ;;  %v405_v11 = vld [vmem:[#allocation7] sm:$0xff] }
  0x17   :  { %v420_v12 = vld [vmem:[#allocation8 + $0x38] sm:$0xff]  ;;  %v419_v13 = vld [vmem:[#allocation8 + $0x30] sm:$0xff]  ;;  %v418_v14 = vld [vmem:[#allocation8 + $0x28] sm:$0xff] }
  0x18   :  { %119 = vmatpush.bf16.msra.mxu0 %v403_v2  ;;  %274 = vmatpush.bf16.msra.mxu2 %v420_v12  ;;  %v417_v15 = vld [vmem:[#allocation8 + $0x20] sm:$0xff]  ;;  %v416_v16 = vld [vmem:[#allocation8 + $0x18] sm:$0xff]  ;;  %v415_v17 = vld [vmem:[#allocation8 + $0x10] sm:$0xff] }
  0x19   :  { %194 = vmatpush.bf16.msra.mxu1 %v411_v4  ;;  %v428_v18 = vld [vmem:[%s622_s2] ss:$0 sm:$0xff]  ;;  %v413_v25 = vld [vmem:[#allocation8] sm:$0xff] }
  0x1a   :  { %v414_v19 = vld [vmem:[#allocation8 + $0x8] sm:$0xff] }
  0x1b   :  { %338 = vmatmul.msk.bf16.vlgmr.msra.gmra.mxu0 %vm108_vm0, %v87_v5  ;;  %v288_v32 = vld [vmem:[%s625_s5] sm:$0x1] }
  0x1c   :  { %275 = vmatpush.bf16.msra.mxu2 %v419_v13 }
  0x1d   :  { %195 = vmatpush.bf16.msra.mxu1 %v410_v6 }
  0x20   :  { %276 = vmatpush.bf16.msra.mxu2 %v418_v14 }
  0x21   :  { %196 = vmatpush.bf16.msra.mxu1 %v409_v7 }
  0x24   :  { %277 = vmatpush.bf16.msra.mxu2 %v417_v15 }
  0x25   :  { %197 = vmatpush.bf16.msra.mxu1 %v408_v8 }
  0x28   :  { %278 = vmatpush.bf16.msra.mxu2 %v416_v16 }
  0x29   :  { %198 = vmatpush.bf16.msra.mxu1 %v407_v9 }
  0x2c   :  { %279 = vmatpush.bf16.msra.mxu2 %v415_v17 }
  0x2d   :  { %199 = vmatpush.bf16.msra.mxu1 %v406_v10 }
  0x30   :  { %280 = vmatpush.bf16.msra.mxu2 %v414_v19 }
  0x31   :  { %200 = vmatpush.bf16.msra.mxu1 %v405_v11 }
  0x34   :  { %281 = vmatpush.bf16.msra.mxu2 %v413_v25 }
  0x98   :  { %v121_v20 = vpop.f32.mrf.mxu0 }
  0x99   :  { %v122_v21 = vadd.f32 %v428_v18, %v121_v20 }
  0x9b   :  { %v127_v22 = vmax.f32 %v122_v21, 0.0 }
  0x9d   :  { %v128_v23 = vpack.c.bf16 %v127_v22, %v127_v22 }
  0x9f   :  { %201 = vmatmul.bf16.vlgmr.msra.gmra.mxu1 %v128_v23 }
  0xa0   :  { %v123_v24 = vpop.f32.mrf.mxu0 }
 0x11c   :  { %v202_v26 = vpop.f32.mrf.mxu1 }
 0x11d   :  { %v208_v27 = vmax.f32 %v202_v26, 0.0 }
 0x11f   :  { %v209_v28 = vpack.c.bf16 %v208_v27, %v208_v27 }
 0x121   :  { %282 = vmatmul.bf16.vlgmr.msra.gmra.mxu2 %v209_v28 }
 0x124   :  { %v204_v29 = vpop.f32.mrf.mxu1 }
 0x1a4   :  { %v283_v30 = vpop.f32.mrf.mxu2 }
 0x1a5   :  { %v287_v31 = vmax.f32 %v283_v30, 0.0 }
 0x1a7   :  { %304 = vmatpush.xpose.msra.mxu3 %v287_v31 }
 0x1aa   :  { %305 = vmatmul.f32.vlgmr.msra.gmra.mxu3 %v288_v32 }
 0x1ac   :  { %v285_v33 = vpop.f32.mrf.mxu2 }
 0x22d   :  { %v306_v34 = vpop.f32.mrf.mxu3 }
 0x22e   :  { %310 = vst.msk [vmem:[#allocation10] sm:$0x1] %vm309_vm1, %v306_v34 }
 0x22f   :  { %321 = dma.vmem_to_hbm [thread:$0]  %s317_s19, 16, %s319_s22, [#allocation4]  }
 0x230   :  { %555 = dma.done.wait [#allocation4], 16  }
 0x231   :  { %556 = vsyncadd [#allocation4], 4294967280 }
 0x232   :  { %326 = vsyncpa [#allocation3], 1 }
 0x233   :  { %327 = vsyncpa [#allocation6], 1 }
 0x234   :  { %328 = vsyncpa [#allocation9], 1 }
 0x235   :  { %329 = vsyncpa [#allocation4], 1 }

</bundles_post_ra>
